<compile_context>
chip_gen: v5e
topology: v5e:2x2
jax: 0.10.0
libtpu: 0.0.40
codegen_flags: <defaults>
</compile_context>

<pallas_src>
import jax
import jax.numpy as jnp
from jax.experimental import pallas as pl
from jax.experimental.pallas import tpu as pltpu

_NEG = -1e30    # f32 bias for padded logit columns (exp underflows to 0)


def _round_up(n, m):
    return ((n + m - 1) // m) * m


# ----------------------------------------------------------------------------
# Fused kernel: [conv-as-matmul + ReLU + global avg pool] -> Linear -> LayerNorm
#               -> ReLU -> Linear -> LogSoftmax, for one (TB, ...) batch tile.
# Matmuls: bf16 inputs, f32 accumulation.  Everything elementwise: f32.
# ----------------------------------------------------------------------------
def _fused_kernel(patches_ref, wc_ref, bc_ref, w1_ref, b1_ref, g_ref, bta_ref,
                  w2_ref, b2_ref, out_ref):
    tb, hw, k = patches_ref.shape
    f = wc_ref.shape[1]

    # --- stand-in backbone: 3x3 conv as ONE MXU matmul, ReLU, global avg pool ---
    xcol = patches_ref[...].reshape(tb * hw, k).astype(jnp.bfloat16)      # (TB*HW, K)
    y = jnp.dot(xcol, wc_ref[...], preferred_element_type=jnp.float32)    # (TB*HW, F) f32
    y = jnp.maximum(y + bc_ref[...], 0.0)
    feats = jnp.mean(y.reshape(tb, hw, f), axis=1)                        # (TB, F) f32  (== x.view(B, -1))

    # --- new_fc_sequence: Linear(F, 512) -> LayerNorm(512, eps=1e-5) -> ReLU -> Linear(512, NC) ---
    h = jnp.dot(feats.astype(jnp.bfloat16), w1_ref[...],
                preferred_element_type=jnp.float32) + b1_ref[...]
    mu = jnp.mean(h, axis=-1, keepdims=True)
    var = jnp.mean((h - mu) * (h - mu), axis=-1, keepdims=True)
    hn = (h - mu) * jax.lax.rsqrt(var + 1e-5) * g_ref[...] + bta_ref[...]
    hn = jnp.maximum(hn, 0.0)
    logits = jnp.dot(hn.astype(jnp.bfloat16), w2_ref[...],
                     preferred_element_type=jnp.float32) + b2_ref[...]    # b2 is f32, pad cols = -1e30

    # --- LogSoftmax(dim=-1); padded columns carry a -1e30 bias and contribute exp()=0 ---
    m = jnp.max(logits, axis=-1, keepdims=True)
    z = logits - m
    lse = jnp.log(jnp.sum(jnp.exp(z), axis=-1, keepdims=True))
    out_ref[...] = z - lse


# ----------------------------------------------------------------------------
# Plain-JAX glue: im2col for the 3x3 / stride 1 / pad 1 stand-in conv.
# TODO(synk): with a real backbone, replace this HBM im2col with in-kernel
# shifted accumulating matmuls over an NHWC halo tile.
# ----------------------------------------------------------------------------
def _im2col_3x3(x):
    B, C, H, W = x.shape
    xp = jnp.pad(x, ((0, 0), (0, 0), (1, 1), (1, 1)))
    cols = [xp[:, :, di:di + H, dj:dj + W] for di in range(3) for dj in range(3)]
    patches = jnp.stack(cols, axis=2)                     # (B, C, 9, H, W)
    return patches.transpose(0, 3, 4, 1, 2).reshape(B, H * W, C * 9)


def _pick_batch_tile(B):
    # >= 2 tiles when possible (v7x megacore), TB <= 64 (v7x 64 MiB VMEM headroom).
    if B % 8 == 0 and B > 8:
        for cand in (64, 32, 16, 8):
            if B % cand == 0 and (B // cand) >= 2:
                return cand
    return B          # small / ragged batch: single full-batch tile (block dim == array dim)


def custom_resnet_forward(x, params):
    B, C, H, W = x.shape
    HW = H * W
    K = 9 * C
    F = params["w_conv"].shape[1]
    H1 = params["w1"].shape[1]
    NC = params["w2"].shape[1]
    NCP = _round_up(NC, 128)          # only the logits dim is padded (lane-dense output store)

    TB = _pick_batch_tile(B)
    nb = B // TB

    # im2col; no K / batch padding in HBM.
    patches = _im2col_3x3(x)                                             # (B, HW, K) f32

    # Weights in bf16 (f32 accumulation in-kernel); biases / LN params stay f32.
    wc = params["w_conv"].astype(jnp.bfloat16)                           # (K, F)
    bc = params["b_conv"]                                                # (1, F) f32
    w1 = params["w1"].astype(jnp.bfloat16)                               # (F, H1)
    b1, g, beta = params["b1"], params["gamma"], params["beta"]          # f32
    w2 = jnp.pad(params["w2"], ((0, 0), (0, NCP - NC))).astype(jnp.bfloat16)
    b2 = jnp.pad(params["b2"], ((0, 0), (0, NCP - NC)), constant_values=_NEG)  # f32

    out_padded = pl.pallas_call(
        _fused_kernel,
        out_shape=jax.ShapeDtypeStruct((B, NCP), jnp.float32),
        grid=(nb,),
        in_specs=[
            pl.BlockSpec((TB, HW, K), lambda b: (b, 0, 0)),    # patches (batch tile)
            pl.BlockSpec((K, F), lambda b: (0, 0)),            # w_conv (bf16)
            pl.BlockSpec((1, F), lambda b: (0, 0)),            # b_conv
            pl.BlockSpec((F, H1), lambda b: (0, 0)),           # w1 (bf16)
            pl.BlockSpec((1, H1), lambda b: (0, 0)),           # b1
            pl.BlockSpec((1, H1), lambda b: (0, 0)),           # gamma
            pl.BlockSpec((1, H1), lambda b: (0, 0)),           # beta
            pl.BlockSpec((H1, NCP), lambda b: (0, 0)),         # w2 (bf16)
            pl.BlockSpec((1, NCP), lambda b: (0, 0)),          # b2 (f32, pad = -1e30)
        ],
        out_specs=pl.BlockSpec((TB, NCP), lambda b: (b, 0)),
        compiler_params=pltpu.CompilerParams(
            dimension_semantics=("parallel",)),
    )(patches, wc, bc, w1, b1, g, beta, w2, b2)

    return out_padded[:, :NC]


# ----------------------------------------------------------------------------
# Parameter setup (mirrors CustomResNet._initialize_weights; weights stored [in, out]).
# ----------------------------------------------------------------------------
def init_params(key, c_in, num_ftrs, hidden=512, num_classes=100):
    k_conv, k1, k2 = jax.random.split(key, 3)
    # Stand-in backbone conv.
    w_conv = jax.random.normal(k_conv, (c_in * 9, num_ftrs), jnp.float32) * (
        2.0 / (c_in * 9)) ** 0.5
    b_conv = jnp.zeros((1, num_ftrs), jnp.float32)
    # nn.Linear(num_ftrs, 512): kaiming_normal_(mode='fan_out', relu) -> std = sqrt(2/out).
    w1 = jax.random.normal(k1, (num_ftrs, hidden), jnp.float32) * (2.0 / hidden) ** 0.5
    b1 = jnp.zeros((1, hidden), jnp.float32)
    # nn.LayerNorm(512): weight=1, bias=0.
    gamma = jnp.ones((1, hidden), jnp.float32)
    beta = jnp.zeros((1, hidden), jnp.float32)
    # nn.Linear(512, 100): kaiming_normal_(mode='fan_out', relu) -> std = sqrt(2/num_classes).
    w2 = jax.random.normal(k2, (hidden, num_classes), jnp.float32) * (
        2.0 / num_classes) ** 0.5
    b2 = jnp.zeros((1, num_classes), jnp.float32)
    return dict(w_conv=w_conv, b_conv=b_conv, w1=w1, b1=b1,
                gamma=gamma, beta=beta, w2=w2, b2=b2)


# Pure-JAX reference at matching precision (bf16 matmul inputs, f32 accumulate / elementwise).
def reference_forward(x, params):
    B = x.shape[0]
    patches = _im2col_3x3(x)
    HW, K = patches.shape[1], patches.shape[2]
    xcol = patches.reshape(B * HW, K).astype(jnp.bfloat16)
    y = jnp.dot(xcol, params["w_conv"].astype(jnp.bfloat16),
                preferred_element_type=jnp.float32)
    y = jnp.maximum(y + params["b_conv"], 0.0)
    feats = jnp.mean(y.reshape(B, HW, -1), axis=1)
    h = jnp.dot(feats.astype(jnp.bfloat16), params["w1"].astype(jnp.bfloat16),
                preferred_element_type=jnp.float32) + params["b1"]
    mu = jnp.mean(h, -1, keepdims=True)
    var = jnp.mean((h - mu) ** 2, -1, keepdims=True)
    hn = (h - mu) * jax.lax.rsqrt(var + 1e-5) * params["gamma"] + params["beta"]
    hn = jnp.maximum(hn, 0.0)
    logits = jnp.dot(hn.astype(jnp.bfloat16), params["w2"].astype(jnp.bfloat16),
                     preferred_element_type=jnp.float32) + params["b2"]
    return jax.nn.log_softmax(logits, axis=-1)


if __name__ == "__main__":
    key = jax.random.PRNGKey(0)
    k_x, k_p = jax.random.split(key)

    B, C, H, W = 2, 4, 16, 16        # small NCHW input
    NUM_FTRS = 64                    # stand-in backbone feature width (num_ftrs)

    x = jax.random.normal(k_x, (B, C, H, W), jnp.float32)
    params = init_params(k_p, C, NUM_FTRS)

    fwd = jax.jit(custom_resnet_forward)
    out = jax.block_until_ready(fwd(x, params))

    ref = reference_forward(x, params)
    assert out.shape == (B, 100), out.shape
    max_err = float(jnp.abs(out - ref).max())
    assert jnp.allclose(out, ref, atol=2e-3, rtol=2e-3), max_err
    # log-softmax rows must exponentiate-sum to 1
    assert jnp.allclose(jnp.sum(jnp.exp(out), axis=-1), 1.0, atol=1e-3)

    print("KERNEL_OK")
</pallas_src>

<mosaic_0001>
module attributes {stable_mosaic.version = 11 : i64} {
  func.func @_fused_kernel(%arg0: i32, %arg1: memref<2x256x36xf32, #tpu.memory_space<vmem>>, %arg2: memref<36x64xbf16, #tpu.memory_space<vmem>>, %arg3: memref<1x64xf32, #tpu.memory_space<vmem>>, %arg4: memref<64x512xbf16, #tpu.memory_space<vmem>>, %arg5: memref<1x512xf32, #tpu.memory_space<vmem>>, %arg6: memref<1x512xf32, #tpu.memory_space<vmem>>, %arg7: memref<1x512xf32, #tpu.memory_space<vmem>>, %arg8: memref<512x128xbf16, #tpu.memory_space<vmem>>, %arg9: memref<1x128xf32, #tpu.memory_space<vmem>>, %arg10: memref<2x128xf32, #tpu.memory_space<vmem>>) attributes {dimension_semantics = [#tpu.dimension_semantics<parallel>], iteration_bounds = array<i64: 1>, scalar_prefetch = 0 : i64, scratch_operands = 0 : i64, tpu.core_type = #tpu.core_type<tc>, window_params = [{transform_indices = @transform_0, window_bounds = array<i64: 2, 256, 36>}, {pipeline_mode = #tpu.pipeline_mode<synchronous>, transform_indices = @transform_1, window_bounds = array<i64: 36, 64>}, {pipeline_mode = #tpu.pipeline_mode<synchronous>, transform_indices = @transform_2, window_bounds = array<i64: 1, 64>}, {pipeline_mode = #tpu.pipeline_mode<synchronous>, transform_indices = @transform_3, window_bounds = array<i64: 64, 512>}, {pipeline_mode = #tpu.pipeline_mode<synchronous>, transform_indices = @transform_4, window_bounds = array<i64: 1, 512>}, {pipeline_mode = #tpu.pipeline_mode<synchronous>, transform_indices = @transform_5, window_bounds = array<i64: 1, 512>}, {pipeline_mode = #tpu.pipeline_mode<synchronous>, transform_indices = @transform_6, window_bounds = array<i64: 1, 512>}, {pipeline_mode = #tpu.pipeline_mode<synchronous>, transform_indices = @transform_7, window_bounds = array<i64: 512, 128>}, {pipeline_mode = #tpu.pipeline_mode<synchronous>, transform_indices = @transform_8, window_bounds = array<i64: 1, 128>}, {transform_indices = @transform_9, window_bounds = array<i64: 2, 128>}]} {
    %c0 = arith.constant 0 : index
    %c0_0 = arith.constant 0 : index
    %c0_1 = arith.constant 0 : index
    %0 = vector.load %arg1[%c0, %c0_0, %c0_1] : memref<2x256x36xf32, #tpu.memory_space<vmem>>, vector<2x256x36xf32>
    %1 = vector.shape_cast %0 : vector<2x256x36xf32> to vector<512x36xf32>
    %2 = arith.truncf %1 : vector<512x36xf32> to vector<512x36xbf16>
    %c0_2 = arith.constant 0 : index
    %c0_3 = arith.constant 0 : index
    %3 = vector.load %arg2[%c0_2, %c0_3] : memref<36x64xbf16, #tpu.memory_space<vmem>>, vector<36x64xbf16>
    %cst = arith.constant dense<0.000000e+00> : vector<512x64xf32>
    %4 = tpu.matmul %2, %3, %cst {dimension_numbers = #tpu.dot_dimension_numbers<[1], [0], [0], [1], [0, 0, 1, 1], [], []>} : vector<512x36xbf16>, vector<36x64xbf16>, vector<512x64xf32> -> vector<512x64xf32>
    %c0_4 = arith.constant 0 : index
    %c0_5 = arith.constant 0 : index
    %5 = vector.load %arg3[%c0_4, %c0_5] : memref<1x64xf32, #tpu.memory_space<vmem>>, vector<1x64xf32>
    %6 = vector.broadcast %5 : vector<1x64xf32> to vector<512x64xf32>
    %7 = arith.addf %4, %6 : vector<512x64xf32>
    %cst_6 = arith.constant 0.000000e+00 : f32
    %8 = vector.broadcast %cst_6 : f32 to vector<512x64xf32>
    %9 = arith.maximumf %7, %8 : vector<512x64xf32>
    %10 = vector.shape_cast %9 : vector<512x64xf32> to vector<2x256x64xf32>
    %cst_7 = arith.constant dense<0.000000e+00> : vector<2x64xf32>
    %11 = vector.multi_reduction <add>, %10, %cst_7 [1] : vector<2x256x64xf32> to vector<2x64xf32>
    %cst_8 = arith.constant 2.560000e+02 : f32
    %12 = vector.broadcast %cst_8 : f32 to vector<2x64xf32>
    %13 = arith.divf %11, %12 : vector<2x64xf32>
    %14 = arith.truncf %13 : vector<2x64xf32> to vector<2x64xbf16>
    %c0_9 = arith.constant 0 : index
    %c0_10 = arith.constant 0 : index
    %15 = vector.load %arg4[%c0_9, %c0_10] : memref<64x512xbf16, #tpu.memory_space<vmem>>, vector<64x512xbf16>
    %cst_11 = arith.constant dense<0.000000e+00> : vector<2x512xf32>
    %16 = tpu.matmul %14, %15, %cst_11 {dimension_numbers = #tpu.dot_dimension_numbers<[1], [0], [0], [1], [0, 0, 1, 1], [], []>} : vector<2x64xbf16>, vector<64x512xbf16>, vector<2x512xf32> -> vector<2x512xf32>
    %c0_12 = arith.constant 0 : index
    %c0_13 = arith.constant 0 : index
    %17 = vector.load %arg5[%c0_12, %c0_13] : memref<1x512xf32, #tpu.memory_space<vmem>>, vector<1x512xf32>
    %18 = vector.broadcast %17 : vector<1x512xf32> to vector<2x512xf32>
    %19 = arith.addf %16, %18 : vector<2x512xf32>
    %cst_14 = arith.constant dense<0.000000e+00> : vector<2xf32>
    %20 = vector.multi_reduction <add>, %19, %cst_14 [1] : vector<2x512xf32> to vector<2xf32>
    %21 = vector.shape_cast %20 : vector<2xf32> to vector<2x1xf32>
    %cst_15 = arith.constant 5.120000e+02 : f32
    %22 = vector.broadcast %cst_15 : f32 to vector<2x1xf32>
    %23 = arith.divf %21, %22 : vector<2x1xf32>
    %24 = vector.broadcast %23 : vector<2x1xf32> to vector<2x512xf32>
    %25 = arith.subf %19, %24 : vector<2x512xf32>
    %26 = vector.broadcast %23 : vector<2x1xf32> to vector<2x512xf32>
    %27 = arith.subf %19, %26 : vector<2x512xf32>
    %28 = arith.mulf %25, %27 : vector<2x512xf32>
    %cst_16 = arith.constant dense<0.000000e+00> : vector<2xf32>
    %29 = vector.multi_reduction <add>, %28, %cst_16 [1] : vector<2x512xf32> to vector<2xf32>
    %30 = vector.shape_cast %29 : vector<2xf32> to vector<2x1xf32>
    %cst_17 = arith.constant 5.120000e+02 : f32
    %31 = vector.broadcast %cst_17 : f32 to vector<2x1xf32>
    %32 = arith.divf %30, %31 : vector<2x1xf32>
    %33 = vector.broadcast %23 : vector<2x1xf32> to vector<2x512xf32>
    %34 = arith.subf %19, %33 : vector<2x512xf32>
    %cst_18 = arith.constant 9.99999974E-6 : f32
    %35 = vector.broadcast %cst_18 : f32 to vector<2x1xf32>
    %36 = arith.addf %32, %35 : vector<2x1xf32>
    %37 = math.rsqrt %36 : vector<2x1xf32>
    %38 = vector.broadcast %37 : vector<2x1xf32> to vector<2x512xf32>
    %39 = arith.mulf %34, %38 : vector<2x512xf32>
    %c0_19 = arith.constant 0 : index
    %c0_20 = arith.constant 0 : index
    %40 = vector.load %arg6[%c0_19, %c0_20] : memref<1x512xf32, #tpu.memory_space<vmem>>, vector<1x512xf32>
    %41 = vector.broadcast %40 : vector<1x512xf32> to vector<2x512xf32>
    %42 = arith.mulf %39, %41 : vector<2x512xf32>
    %c0_21 = arith.constant 0 : index
    %c0_22 = arith.constant 0 : index
    %43 = vector.load %arg7[%c0_21, %c0_22] : memref<1x512xf32, #tpu.memory_space<vmem>>, vector<1x512xf32>
    %44 = vector.broadcast %43 : vector<1x512xf32> to vector<2x512xf32>
    %45 = arith.addf %42, %44 : vector<2x512xf32>
    %cst_23 = arith.constant 0.000000e+00 : f32
    %46 = vector.broadcast %cst_23 : f32 to vector<2x512xf32>
    %47 = arith.maximumf %45, %46 : vector<2x512xf32>
    %48 = arith.truncf %47 : vector<2x512xf32> to vector<2x512xbf16>
    %c0_24 = arith.constant 0 : index
    %c0_25 = arith.constant 0 : index
    %49 = vector.load %arg8[%c0_24, %c0_25] : memref<512x128xbf16, #tpu.memory_space<vmem>>, vector<512x128xbf16>
    %cst_26 = arith.constant dense<0.000000e+00> : vector<2x128xf32>
    %50 = tpu.matmul %48, %49, %cst_26 {dimension_numbers = #tpu.dot_dimension_numbers<[1], [0], [0], [1], [0, 0, 1, 1], [], []>} : vector<2x512xbf16>, vector<512x128xbf16>, vector<2x128xf32> -> vector<2x128xf32>
    %c0_27 = arith.constant 0 : index
    %c0_28 = arith.constant 0 : index
    %51 = vector.load %arg9[%c0_27, %c0_28] : memref<1x128xf32, #tpu.memory_space<vmem>>, vector<1x128xf32>
    %52 = vector.broadcast %51 : vector<1x128xf32> to vector<2x128xf32>
    %53 = arith.addf %50, %52 : vector<2x128xf32>
    %cst_29 = arith.constant dense<0xFF800000> : vector<2xf32>
    %54 = vector.multi_reduction <maximumf>, %53, %cst_29 [1] : vector<2x128xf32> to vector<2xf32>
    %55 = vector.shape_cast %54 : vector<2xf32> to vector<2x1xf32>
    %56 = vector.broadcast %55 : vector<2x1xf32> to vector<2x128xf32>
    %57 = arith.subf %53, %56 : vector<2x128xf32>
    %58 = math.exp %57 : vector<2x128xf32>
    %cst_30 = arith.constant dense<0.000000e+00> : vector<2xf32>
    %59 = vector.multi_reduction <add>, %58, %cst_30 [1] : vector<2x128xf32> to vector<2xf32>
    %60 = vector.shape_cast %59 : vector<2xf32> to vector<2x1xf32>
    %61 = math.log %60 : vector<2x1xf32>
    %62 = vector.broadcast %61 : vector<2x1xf32> to vector<2x128xf32>
    %63 = arith.subf %57, %62 : vector<2x128xf32>
    %c0_31 = arith.constant 0 : index
    %c0_32 = arith.constant 0 : index
    %64 = vector.load %arg10[%c0_31, %c0_32] : memref<2x128xf32, #tpu.memory_space<vmem>>, vector<2x128xf32>
    tpu.vector_store %arg10[%c0_31, %c0_32], %63 {strides = array<i32>} : memref<2x128xf32, #tpu.memory_space<vmem>>, vector<2x128xf32>,
    return
  }
  func.func @transform_0(%arg0: i32) -> (i32, i32, i32) {
    %c0_i32 = arith.constant 0 : i32
    %c0_i32_0 = arith.constant 0 : i32
    %c0_i32_1 = arith.constant 0 : i32
    return %arg0, %c0_i32, %c0_i32_0 : i32, i32, i32
  }
  func.func @transform_1(%arg0: i32) -> (i32, i32) {
    %c0_i32 = arith.constant 0 : i32
    %c0_i32_0 = arith.constant 0 : i32
    %c0_i32_1 = arith.constant 0 : i32
    return %c0_i32, %c0_i32_0 : i32, i32
  }
  func.func @transform_2(%arg0: i32) -> (i32, i32) {
    %c0_i32 = arith.constant 0 : i32
    %c0_i32_0 = arith.constant 0 : i32
    %c0_i32_1 = arith.constant 0 : i32
    return %c0_i32, %c0_i32_0 : i32, i32
  }
  func.func @transform_3(%arg0: i32) -> (i32, i32) {
    %c0_i32 = arith.constant 0 : i32
    %c0_i32_0 = arith.constant 0 : i32
    %c0_i32_1 = arith.constant 0 : i32
    return %c0_i32, %c0_i32_0 : i32, i32
  }
  func.func @transform_4(%arg0: i32) -> (i32, i32) {
    %c0_i32 = arith.constant 0 : i32
    %c0_i32_0 = arith.constant 0 : i32
    %c0_i32_1 = arith.constant 0 : i32
    return %c0_i32, %c0_i32_0 : i32, i32
  }
  func.func @transform_5(%arg0: i32) -> (i32, i32) {
    %c0_i32 = arith.constant 0 : i32
    %c0_i32_0 = arith.constant 0 : i32
    %c0_i32_1 = arith.constant 0 : i32
    return %c0_i32, %c0_i32_0 : i32, i32
  }
  func.func @transform_6(%arg0: i32) -> (i32, i32) {
    %c0_i32 = arith.constant 0 : i32
    %c0_i32_0 = arith.constant 0 : i32
    %c0_i32_1 = arith.constant 0 : i32
    return %c0_i32, %c0_i32_0 : i32, i32
  }
  func.func @transform_7(%arg0: i32) -> (i32, i32) {
    %c0_i32 = arith.constant 0 : i32
    %c0_i32_0 = arith.constant 0 : i32
    %c0_i32_1 = arith.constant 0 : i32
    return %c0_i32, %c0_i32_0 : i32, i32
  }
  func.func @transform_8(%arg0: i32) -> (i32, i32) {
    %c0_i32 = arith.constant 0 : i32
    %c0_i32_0 = arith.constant 0 : i32
    %c0_i32_1 = arith.constant 0 : i32
    return %c0_i32, %c0_i32_0 : i32, i32
  }
  func.func @transform_9(%arg0: i32) -> (i32, i32) {
    %c0_i32 = arith.constant 0 : i32
    %c0_i32_0 = arith.constant 0 : i32
    return %arg0, %c0_i32 : i32, i32
  }
}

</mosaic_0001>

<bundles_post_ra>
// kernel: custom_resnet_forward.1
= control target key start
LH: loop header
LB: loop body
LE: loop exit
PB: predicated region body
PF: predicated region fallthrough
CT: control target
= control target key end

     0   :  { %vm251_vm0 = vcmask 1041408   ;;  %s2348_s0 = inlined_call_operand.vmem [shape: f32[2,256,36], index: 0, kind: input, shape index: {}]   ;;  %s2349_s1 = inlined_call_operand.vmem [shape: bf16[36,64], index: 1, kind: input, shape index: {}]   ;;  %s2350_s2 = inlined_call_operand.vmem [shape: f32[1,64], index: 2, kind: input, shape index: {}]   ;;  %s2351_s3 = inlined_call_operand.vmem [shape: bf16[64,512], index: 3, kind: input, shape index: {}]   ;;  %s2352_s4 = inlined_call_operand.vmem [shape: f32[1,512], index: 4, kind: input, shape index: {}]   ;;  %s2353_s5 = inlined_call_operand.vmem [shape: f32[1,512], index: 5, kind: input, shape index: {}]   ;;  %s2354_s6 = inlined_call_operand.vmem [shape: f32[1,512], index: 6, kind: input, shape index: {}]   ;;  %s2355_s7 = inlined_call_operand.vmem [shape: bf16[512,128], index: 7, kind: input, shape index: {}]   ;;  %s2356_s8 = inlined_call_operand.vmem [shape: f32[1,128], index: 8, kind: input, shape index: {}]   ;;  %s2357_s9 = inlined_call_operand.hbm [shape: f32[2,128], index: 9, kind: output, shape index: {}]  }
   0x1   :  { %v134_v0 = vld [vmem:[%s2349_s1 + $0x10] sm:$0x3] }
   0x2   :  { %v148_v1 = vunpack.c.l.b16 %v134_v0 }
   0x4   :  { %v151_v2 = vpack.c.b16 %v148_v1, %v148_v1 }
   0x6   :  { %v253_v3 = vsel %vm251_vm0, %v151_v2, 0 }
   0x7   :  { %14 = vsyncpa [#allocation3], 0  ;;  %260 = vmatpush.bf16.msra.mxu0 %v253_v3  ;;  %1519 = vmatpush.bf16.msra.mxu1 %v253_v3  ;;  %v1470_v4 = vld [vmem:[%s2349_s1 + $0x8] sm:$0xff]  ;;  %v1469_v5 = vld [vmem:[%s2349_s1] sm:$0xff]  ;;  %vm154_vm1 = vcmask 293888   ;;  %vm488_vm2 = vcmask 523264  }
   0x8   :  { %1520 = vmatpush.bf16.msra.mxu2 %v253_v3  ;;  %1521 = vmatpush.bf16.msra.mxu3 %v253_v3  ;;  %v34_v6 = vld [vmem:[%s2348_s0] sm:$0xff]  ;;  %v35_v7 = vld [vmem:[%s2348_s0 + $0x8] sm:$0xff]  ;;  %v56_v8 = vld [vmem:[%s2348_s0 + $0xb0] sm:$0xff]  ;;  %vm668_vm4 = vcmask 1041409   ;;  %s1224_s21 = sshll.u32 %s2357_s9, 4  ;;  %s1225_s21 = int_to_ptr.hbm [resolvable:$true] %s1224_s21 }
   0x9   :  { %v57_v9 = vld [vmem:[%s2348_s0 + $0xb8] sm:$0xff]  ;;  %v98_v10 = vpack.c.bf16 %v35_v7, %v34_v6  ;;  %v70_v12 = vld [vmem:[%s2348_s0 + $0x120] sm:$0xff]  ;;  %v71_v13 = vld [vmem:[%s2348_s0 + $0x128] sm:$0xff] }
   0xa   :  { %v109_v11 = vpack.c.bf16 %v57_v9, %v56_v8  ;;  %v82_v14 = vld [vmem:[%s2348_s0 + $0x180] sm:$0xff]  ;;  %v116_v15 = vpack.c.bf16 %v71_v13, %v70_v12  ;;  %v83_v16 = vld [vmem:[%s2348_s0 + $0x188] sm:$0xff]  ;;  %v36_v18 = vld [vmem:[%s2348_s0 + $0x10] sm:$0xff] }
   0xb   :  { %261 = vmatpush.bf16.msra.mxu0 %v1470_v4  ;;  %1522 = vmatpush.bf16.msra.mxu1 %v1470_v4  ;;  %v122_v17 = vpack.c.bf16 %v83_v16, %v82_v14  ;;  %v37_v19 = vld [vmem:[%s2348_s0 + $0x18] sm:$0xff]  ;;  %v58_v20 = vld [vmem:[%s2348_s0 + $0xc0] sm:$0xff]  ;;  %v59_v21 = vld [vmem:[%s2348_s0 + $0xc8] sm:$0xff] }
   0xc   :  { %1523 = vmatpush.bf16.msra.mxu2 %v1470_v4  ;;  %1524 = vmatpush.bf16.msra.mxu3 %v1470_v4  ;;  %v99_v22 = vpack.c.bf16 %v37_v19, %v36_v18  ;;  %v110_v23 = vpack.c.bf16 %v59_v21, %v58_v20  ;;  %v72_v24 = vld [vmem:[%s2348_s0 + $0x130] sm:$0xff]  ;;  %v73_v25 = vld [vmem:[%s2348_s0 + $0x138] sm:$0xff]  ;;  %v38_v30 = vld [vmem:[%s2348_s0 + $0x20] sm:$0xff] }
   0xd   :  { %v84_v26 = vld [vmem:[%s2348_s0 + $0x190] sm:$0xff]  ;;  %v117_v27 = vpack.c.bf16 %v73_v25, %v72_v24  ;;  %v85_v28 = vld [vmem:[%s2348_s0 + $0x198] sm:$0xff]  ;;  %v39_v31 = vld [vmem:[%s2348_s0 + $0x28] sm:$0xff] }
   0xe   :  { %v123_v29 = vpack.c.bf16 %v85_v28, %v84_v26  ;;  %v60_v32 = vld [vmem:[%s2348_s0 + $0xd0] sm:$0xff]  ;;  %v61_v33 = vld [vmem:[%s2348_s0 + $0xd8] sm:$0xff]  ;;  %v100_v34 = vpack.c.bf16 %v39_v31, %v38_v30  ;;  %v74_v36 = vld [vmem:[%s2348_s0 + $0x140] sm:$0xff] }
   0xf   :  { %262 = vmatpush.bf16.msra.mxu0 %v1469_v5  ;;  %1525 = vmatpush.bf16.msra.mxu1 %v1469_v5  ;;  %v111_v35 = vpack.c.bf16 %v61_v33, %v60_v32  ;;  %v75_v37 = vld [vmem:[%s2348_s0 + $0x148] sm:$0xff]  ;;  %v86_v38 = vld [vmem:[%s2348_s0 + $0x1a0] sm:$0xff]  ;;  %v40_v42 = vld [vmem:[%s2348_s0 + $0x30] sm:$0xff] }
  0x10   :  { %1526 = vmatpush.bf16.msra.mxu2 %v1469_v5  ;;  %1527 = vmatpush.bf16.msra.mxu3 %v1469_v5  ;;  %v118_v39 = vpack.c.bf16 %v75_v37, %v74_v36  ;;  %v87_v40 = vld [vmem:[%s2348_s0 + $0x1a8] sm:$0xff]  ;;  %v41_v43 = vld [vmem:[%s2348_s0 + $0x38] sm:$0xff]  ;;  %v62_v44 = vld [vmem:[%s2348_s0 + $0xe0] sm:$0xff] }
  0x11   :  { %v124_v41 = vpack.c.bf16 %v87_v40, %v86_v38  ;;  %v63_v45 = vld [vmem:[%s2348_s0 + $0xe8] sm:$0xff]  ;;  %v101_v46 = vpack.c.bf16 %v41_v43, %v40_v42  ;;  %v76_v48 = vld [vmem:[%s2348_s0 + $0x150] sm:$0xff]  ;;  %v77_v49 = vld [vmem:[%s2348_s0 + $0x158] sm:$0xff] }
  0x12   :  { %1241 = vmatmul.msk.bf16.vlgmr.msra.gmra.mxu0 %vm154_vm1, %v98_v10  ;;  %1252 = vmatmul.msk.bf16.vlgmr.msra.gmra.mxu1 %vm154_vm1, %v109_v11  ;;  %v112_v47 = vpack.c.bf16 %v63_v45, %v62_v44  ;;  %v88_v50 = vld [vmem:[%s2348_s0 + $0x1b0] sm:$0xff]  ;;  %v119_v51 = vpack.c.bf16 %v77_v49, %v76_v48  ;;  %v89_v52 = vld [vmem:[%s2348_s0 + $0x1b8] sm:$0xff]  ;;  %v42_v54 = vld [vmem:[%s2348_s0 + $0x40] sm:$0xff] }
  0x13   :  { %1259 = vmatmul.msk.bf16.vlgmr.msra.gmra.mxu2 %vm154_vm1, %v116_v15  ;;  %1265 = vmatmul.msk.bf16.vlgmr.msra.gmra.mxu3 %vm154_vm1, %v122_v17  ;;  %v125_v53 = vpack.c.bf16 %v89_v52, %v88_v50  ;;  %v43_v55 = vld [vmem:[%s2348_s0 + $0x48] sm:$0xff]  ;;  %v64_v56 = vld [vmem:[%s2348_s0 + $0xf0] sm:$0xff]  ;;  %v65_v57 = vld [vmem:[%s2348_s0 + $0xf8] sm:$0xff] }
  0x14   :  { %v102_v58 = vpack.c.bf16 %v43_v55, %v42_v54  ;;  %v113_v59 = vpack.c.bf16 %v65_v57, %v64_v56  ;;  %v78_v60 = vld [vmem:[%s2348_s0 + $0x160] sm:$0xff]  ;;  %v79_v61 = vld [vmem:[%s2348_s0 + $0x168] sm:$0xff]  ;;  %v44_v2 = vld [vmem:[%s2348_s0 + $0x50] sm:$0xff] }
  0x15   :  { %v90_v62 = vld [vmem:[%s2348_s0 + $0x1c0] sm:$0xff]  ;;  %v120_v63 = vpack.c.bf16 %v79_v61, %v78_v60  ;;  %v91_v0 = vld [vmem:[%s2348_s0 + $0x1c8] sm:$0xff]  ;;  %v45_v3 = vld [vmem:[%s2348_s0 + $0x58] sm:$0xff] }
  0x16   :  { %v126_v1 = vpack.c.bf16 %v91_v0, %v90_v62  ;;  %v66_v4 = vld [vmem:[%s2348_s0 + $0x100] sm:$0xff]  ;;  %v67_v5 = vld [vmem:[%s2348_s0 + $0x108] sm:$0xff]  ;;  %v103_v6 = vpack.c.bf16 %v45_v3, %v44_v2  ;;  %v80_v8 = vld [vmem:[%s2348_s0 + $0x170] sm:$0xff] }
  0x17   :  { %v114_v7 = vpack.c.bf16 %v67_v5, %v66_v4  ;;  %v81_v9 = vld [vmem:[%s2348_s0 + $0x178] sm:$0xff]  ;;  %v92_v10 = vld [vmem:[%s2348_s0 + $0x1d0] sm:$0xff]  ;;  %v46_v14 = vld [vmem:[%s2348_s0 + $0x60] sm:$0xff] }
  0x18   :  { %v121_v11 = vpack.c.bf16 %v81_v9, %v80_v8  ;;  %v93_v12 = vld [vmem:[%s2348_s0 + $0x1d8] sm:$0xff]  ;;  %v47_v15 = vld [vmem:[%s2348_s0 + $0x68] sm:$0xff]  ;;  %v68_v16 = vld [vmem:[%s2348_s0 + $0x110] sm:$0xff] }
  0x19   :  { %v127_v13 = vpack.c.bf16 %v93_v12, %v92_v10  ;;  %v69_v17 = vld [vmem:[%s2348_s0 + $0x118] sm:$0xff]  ;;  %v104_v18 = vpack.c.bf16 %v47_v15, %v46_v14  ;;  %v94_v20 = vld [vmem:[%s2348_s0 + $0x1e0] sm:$0xff]  ;;  %v95_v21 = vld [vmem:[%s2348_s0 + $0x1e8] sm:$0xff] }
  0x1a   :  { %v115_v19 = vpack.c.bf16 %v69_v17, %v68_v16  ;;  %v49_v24 = vld [vmem:[%s2348_s0 + $0x78] sm:$0xff]  ;;  %v96_v26 = vld [vmem:[%s2348_s0 + $0x1f0] sm:$0xff]  ;;  %v51_v30 = vld [vmem:[%s2348_s0 + $0x88] sm:$0xff] }
  0x1b   :  { %v52_v43 = vld [vmem:[%s2348_s0 + $0x90] sm:$0xff]  ;;  %v53_v44 = vld [vmem:[%s2348_s0 + $0x98] sm:$0xff]  ;;  %v54_v61 = vld [vmem:[%s2348_s0 + $0xa0] sm:$0xff] }
  0x1c   :  { %v107_v48 = vpack.c.bf16 %v53_v44, %v52_v43  ;;  %v55_v62 = vld [vmem:[%s2348_s0 + $0xa8] sm:$0xff] }
  0x1d   :  { %v108_v2 = vpack.c.bf16 %v55_v62, %v54_v61 }
  0x22   :  { %1242 = vmatmul.msk.bf16.gmra.mxu0 %vm154_vm1, %v99_v22  ;;  %1253 = vmatmul.msk.bf16.gmra.mxu1 %vm154_vm1, %v110_v23  ;;  %v128_v22 = vpack.c.bf16 %v95_v21, %v94_v20  ;;  %v48_v23 = vld [vmem:[%s2348_s0 + $0x70] sm:$0xff] }
  0x23   :  { %1260 = vmatmul.msk.bf16.gmra.mxu2 %vm154_vm1, %v117_v27  ;;  %1266 = vmatmul.msk.bf16.gmra.mxu3 %vm154_vm1, %v123_v29  ;;  %v105_v25 = vpack.c.bf16 %v49_v24, %v48_v23  ;;  %v97_v27 = vld [vmem:[%s2348_s0 + $0x1f8] sm:$0xff]  ;;  %v50_v29 = vld [vmem:[%s2348_s0 + $0x80] sm:$0xff] }
  0x24   :  { %v129_v28 = vpack.c.bf16 %v97_v27, %v96_v26  ;;  %v106_v31 = vpack.c.bf16 %v51_v30, %v50_v29 }
  0x32   :  { %1243 = vmatmul.msk.bf16.gmra.mxu0 %vm154_vm1, %v100_v34  ;;  %1254 = vmatmul.msk.bf16.gmra.mxu1 %vm154_vm1, %v111_v35  ;;  %v1846_v34 = vld [vmem:[%s2350_s2] ss:$0 sm:$0xff] }
  0x33   :  { %1261 = vmatmul.msk.bf16.gmra.mxu2 %vm154_vm1, %v118_v39  ;;  %1267 = vmatmul.msk.bf16.gmra.mxu3 %vm154_vm1, %v124_v41 }
  0x42   :  { %1244 = vmatmul.msk.bf16.gmra.mxu0 %vm154_vm1, %v101_v46  ;;  %1255 = vmatmul.msk.bf16.gmra.mxu1 %vm154_vm1, %v112_v47 }
  0x43   :  { %1262 = vmatmul.msk.bf16.gmra.mxu2 %vm154_vm1, %v119_v51  ;;  %1268 = vmatmul.msk.bf16.gmra.mxu3 %vm154_vm1, %v125_v53 }
  0x52   :  { %1245 = vmatmul.msk.bf16.gmra.mxu0 %vm154_vm1, %v102_v58  ;;  %1256 = vmatmul.msk.bf16.gmra.mxu1 %vm154_vm1, %v113_v59 }
  0x53   :  { %1263 = vmatmul.msk.bf16.gmra.mxu2 %vm154_vm1, %v120_v63  ;;  %1269 = vmatmul.msk.bf16.gmra.mxu3 %vm154_vm1, %v126_v1 }
  0x62   :  { %1246 = vmatmul.msk.bf16.gmra.mxu0 %vm154_vm1, %v103_v6  ;;  %1257 = vmatmul.msk.bf16.gmra.mxu1 %vm154_vm1, %v114_v7 }
  0x63   :  { %1264 = vmatmul.msk.bf16.gmra.mxu2 %vm154_vm1, %v121_v11  ;;  %1270 = vmatmul.msk.bf16.gmra.mxu3 %vm154_vm1, %v127_v13 }
  0x72   :  { %1247 = vmatmul.msk.bf16.gmra.mxu0 %vm154_vm1, %v104_v18  ;;  %1258 = vmatmul.msk.bf16.gmra.mxu1 %vm154_vm1, %v115_v19 }
  0x73   :  { %1271 = vmatmul.msk.bf16.gmra.mxu3 %vm154_vm1, %v128_v22 }
  0x82   :  { %1248 = vmatmul.msk.bf16.gmra.mxu0 %vm154_vm1, %v105_v25 }
  0x83   :  { %1272 = vmatmul.msk.bf16.gmra.mxu3 %vm154_vm1, %v129_v28 }
  0x8f   :  { %v264_v32 = vpop.f32.mrf.mxu0  ;;  %v1841_v33 = vpop.f32.mrf.mxu1 }
  0x90   :  { %v265_v35 = vadd.f32 %v1846_v34, %v264_v32 }
  0x92   :  { %1249 = vmatmul.msk.bf16.gmra.mxu0 %vm154_vm1, %v106_v31  ;;  %v424_v38 = vmax.f32 %v265_v35, 0.0 }
  0x94   :  { %v489_v45 = vsel %vm488_vm2, %v424_v38, 0.0 }
  0x96   :  { %v1853_v40 = vpop.f32.mrf.mxu2  ;;  %v1855_v42 = vpop.f32.mrf.mxu3 }
  0x97   :  { %v266_v36 = vpop.f32.mrf.mxu0  ;;  %v1850_v37 = vpop.f32.mrf.mxu1 }
  0x98   :  { %v267_v39 = vadd.f32 %v1846_v34, %v266_v36 }
  0x9a   :  { %v425_v41 = vmax.f32 %v267_v39, 0.0 }
  0x9c   :  { %v490_v46 = vsel %vm488_vm2, %v425_v41, 0.0 }
  0x9d   :  { %v491_v47 = vadd.f32 %v490_v46, %v489_v45  ;;  %v1331_v46 = vld [vmem:[%s2351_s3 + $0x68] sm:$0xf] }
  0x9e   :  { %v1869_v53 = vpop.f32.mrf.mxu2  ;;  %v1872_v55 = vpop.f32.mrf.mxu3 }
  0x9f   :  { %v269_v49 = vpop.f32.mrf.mxu0  ;;  %v1865_v50 = vpop.f32.mrf.mxu1 }
  0xa0   :  { %v270_v51 = vadd.f32 %v1846_v34, %v269_v49 }
  0xa2   :  { %v426_v52 = vmax.f32 %v270_v51, 0.0  ;;  %1250 = vmatmul.msk.bf16.gmra.mxu0 %vm154_vm1, %v107_v48 }
  0xa4   :  { %v492_v54 = vsel %vm488_vm2, %v426_v52, 0.0 }
  0xa5   :  { %v493_v56 = vadd.f32 %v492_v54, %v491_v47  ;;  %v1486_v47 = vld [vmem:[%s2351_s3 + $0x74] sm:$0xf0] }
  0xa6   :  { %v1884_v0 = vpop.f32.mrf.mxu2  ;;  %v1886_v3 = vpop.f32.mrf.mxu3  ;;  %v1332_v49 = vor.u32 %v1486_v47, %v1331_v46 }
  0xa7   :  { %v271_v57 = vpop.f32.mrf.mxu0  ;;  %v1874_v58 = vpop.f32.mrf.mxu1 }
  0xa8   :  { %v272_v59 = vadd.f32 %v1846_v34, %v271_v57  ;;  %784 = vmatpush.bf16.msrb.mxu3 %v1332_v49 }
  0xaa   :  { %v427_v60 = vmax.f32 %v272_v59, 0.0 }
  0xac   :  { %v494_v63 = vsel %vm488_vm2, %v427_v60, 0.0 }
  0xad   :  { %v495_v1 = vadd.f32 %v494_v63, %v493_v56 }
  0xae   :  { %v1893_v10 = vpop.f32.mrf.mxu2  ;;  %v1898_v14 = vpop.f32.mrf.mxu3 }
  0xaf   :  { %v274_v4 = vpop.f32.mrf.mxu0  ;;  %v1888_v5 = vpop.f32.mrf.mxu1 }
  0xb0   :  { %v275_v6 = vadd.f32 %v1846_v34, %v274_v4 }
  0xb2   :  { %v428_v7 = vmax.f32 %v275_v6, 0.0  ;;  %1251 = vmatmul.msk.bf16.gmra.mxu0 %vm154_vm1, %v108_v2 }
  0xb4   :  { %v496_v8 = vsel %vm488_vm2, %v428_v7, 0.0 }
  0xb5   :  { %v497_v9 = vadd.f32 %v496_v8, %v495_v1 }
  0xb6   :  { %v1904_v21 = vpop.f32.mrf.mxu2  ;;  %v1906_v23 = vpop.f32.mrf.mxu3 }
  0xb7   :  { %v276_v11 = vpop.f32.mrf.mxu0  ;;  %v1895_v12 = vpop.f32.mrf.mxu1 }
  0xb8   :  { %v277_v13 = vadd.f32 %v1846_v34, %v276_v11 }
  0xba   :  { %v429_v15 = vmax.f32 %v277_v13, 0.0 }
  0xbc   :  { %v498_v16 = vsel %vm488_vm2, %v429_v15, 0.0 }
  0xbd   :  { %v499_v17 = vadd.f32 %v498_v16, %v497_v9 }
  0xbe   :  { %v1912_v30 = vpop.f32.mrf.mxu2  ;;  %v1915_v32 = vpop.f32.mrf.mxu3 }
  0xbf   :  { %v279_v18 = vpop.f32.mrf.mxu0  ;;  %v1901_v19 = vpop.f32.mrf.mxu1 }
  0xc0   :  { %v280_v20 = vadd.f32 %v1846_v34, %v279_v18 }
  0xc2   :  { %v430_v22 = vmax.f32 %v280_v20, 0.0 }
  0xc4   :  { %v500_v24 = vsel %vm488_vm2, %v430_v22, 0.0  ;;  %v1323_v22 = vld [vmem:[%s2351_s3 + $0x60] sm:$0xf] }
  0xc5   :  { %v501_v25 = vadd.f32 %v500_v24, %v499_v17  ;;  %v1485_v24 = vld [vmem:[%s2351_s3 + $0x6c] sm:$0xf0] }
  0xc6   :  { %v1921_v44 = vpop.f32.mrf.mxu2  ;;  %v1929_v48 = vpop.f32.mrf.mxu3 }
  0xc7   :  { %v281_v26 = vpop.f32.mrf.mxu0  ;;  %v1909_v27 = vpop.f32.mrf.mxu1 }
  0xc8   :  { %v282_v28 = vadd.f32 %v1846_v34, %v281_v26  ;;  %v1324_v26 = vor.u32 %v1485_v24, %v1323_v22 }
  0xca   :  { %v431_v29 = vmax.f32 %v282_v28, 0.0  ;;  %758 = vmatpush.bf16.msrb.mxu1 %v1324_v26 }
  0xcc   :  { %v502_v31 = vsel %vm488_vm2, %v431_v29, 0.0 }
  0xcd   :  { %v503_v35 = vadd.f32 %v502_v31, %v501_v25 }
  0xce   :  { %v1935_v60 = vpop.f32.mrf.mxu2  ;;  %v1938_v1 = vpop.f32.mrf.mxu3 }
  0xcf   :  { %v284_v36 = vpop.f32.mrf.mxu0  ;;  %v1917_v38 = vpop.f32.mrf.mxu1 }
  0xd0   :  { %v285_v39 = vadd.f32 %v1846_v34, %v284_v36  ;;  %v1483_v36 = vld [vmem:[%s2351_s3 + $0x64] sm:$0xf] }
  0xd2   :  { %v432_v41 = vmax.f32 %v285_v39, 0.0  ;;  %v1325_v39 = vld [vmem:[%s2351_s3 + $0x70] sm:$0xf0] }
  0xd3   :  { %v1328_v47 = vor.u32 %v1483_v36, %v1325_v39  ;;  %v372_v36 = vadd.f32 %v1846_v34, %v1935_v60 }
  0xd4   :  { %v504_v43 = vsel %vm488_vm2, %v432_v41, 0.0 }
  0xd5   :  { %v505_v45 = vadd.f32 %v504_v43, %v503_v35  ;;  %771 = vmatpush.bf16.msrb.mxu2 %v1328_v47 }
  0xd6   :  { %v374_v9 = vpop.f32.mrf.mxu2  ;;  %v1947_v15 = vpop.f32.mrf.mxu3 }
  0xd7   :  { %v286_v51 = vpop.f32.mrf.mxu0  ;;  %v1931_v52 = vpop.f32.mrf.mxu1  ;;  %v375_v39 = vadd.f32 %v1846_v34, %v374_v9 }
  0xd8   :  { %v287_v54 = vadd.f32 %v1846_v34, %v286_v51 }
  0xda   :  { %v433_v56 = vmax.f32 %v287_v54, 0.0  ;;  %v357_v54 = vadd.f32 %v1846_v34, %v1869_v53 }
  0xdc   :  { %v506_v57 = vsel %vm488_vm2, %v433_v56, 0.0 }
  0xdd   :  { %v507_v59 = vadd.f32 %v506_v57, %v505_v45  ;;  %v355_v45 = vadd.f32 %v1846_v34, %v1853_v40  ;;  %v362_v40 = vadd.f32 %v1846_v34, %v1893_v10  ;;  %v367_v10 = vadd.f32 %v1846_v34, %v1912_v30 }
  0xde   :  { %v376_v35 = vpop.f32.mrf.mxu2  ;;  %v1966_v43 = vpop.f32.mrf.mxu3 }
  0xdf   :  { %v289_v61 = vpop.f32.mrf.mxu0  ;;  %v344_v62 = vpop.f32.mrf.mxu1  ;;  %v463_v22 = vmax.f32 %v362_v40, 0.0 }
  0xe0   :  { %v290_v63 = vadd.f32 %v1846_v34, %v289_v61  ;;  %v345_v11 = vadd.f32 %v1846_v34, %v344_v62  ;;  %v360_v61 = vadd.f32 %v1846_v34, %v1884_v0 }
  0xe2   :  { %v434_v2 = vmax.f32 %v290_v63, 0.0  ;;  %v456_v16 = vmax.f32 %v345_v11, 0.0  ;;  %v461_v63 = vmax.f32 %v357_v54, 0.0  ;;  %v462_v53 = vmax.f32 %v360_v61, 0.0 }
  0xe4   :  { %v508_v4 = vsel %vm488_vm2, %v434_v2, 0.0  ;;  %v558_v28 = vsel %vm488_vm2, %v456_v16, 0.0  ;;  %v567_v0 = vsel %vm488_vm2, %v461_v63, 0.0 }
  0xe5   :  { %v1941_v6 = vadd.f32 %v508_v4, %v507_v59  ;;  %v460_v59 = vmax.f32 %v355_v45, 0.0 }
  0xe7   :  { %v1943_v7 = vpop.f32.mrf.mxu0  ;;  %v346_v8 = vpop.f32.mrf.mxu1  ;;  %v565_v11 = vsel %vm488_vm2, %v460_v59, 0.0 }
  0xe8   :  { %v347_v13 = vadd.f32 %v1846_v34, %v346_v8  ;;  %v379_v8 = vpop.f32.mrf.mxu2 }
  0xe9   :  { %v380_v59 = vadd.f32 %v1846_v34, %v379_v8  ;;  %v1482_v8 = vld [vmem:[%s2351_s3 + $0x54] sm:$0xf0] }
  0xea   :  { %v457_v17 = vmax.f32 %v347_v13, 0.0  ;;  %v365_v13 = vadd.f32 %v1846_v34, %v1904_v21  ;;  %v571_v21 = vsel %vm488_vm2, %v463_v22, 0.0 }
  0xec   :  { %v559_v29 = vsel %vm488_vm2, %v457_v17, 0.0  ;;  %v464_v26 = vmax.f32 %v365_v13, 0.0  ;;  %v1307_v13 = vld [vmem:[%s2351_s3 + $0x40] sm:$0xf] }
  0xed   :  { %v560_v41 = vadd.f32 %v559_v29, %v558_v28  ;;  %v370_v28 = vadd.f32 %v1846_v34, %v1921_v44 }
  0xee   :  { %v573_v45 = vsel %vm488_vm2, %v464_v26, 0.0 }
  0xef   :  { %v1949_v18 = vpop.f32.mrf.mxu0  ;;  %v349_v20 = vpop.f32.mrf.mxu1  ;;  %v466_v30 = vmax.f32 %v370_v28, 0.0 }
  0xf0   :  { %v350_v25 = vadd.f32 %v1846_v34, %v349_v20  ;;  %v1986_v20 = vpop.f32.mrf.mxu3  ;;  %v381_v54 = vpop.f32.mrf.mxu2 }
  0xf1   :  { %v577_v9 = vsel %vm488_vm2, %v466_v30, 0.0  ;;  %v382_v63 = vadd.f32 %v1846_v34, %v381_v54  ;;  %v392_v54 = vadd.f32 %v1846_v34, %v1898_v14 }
  0xf2   :  { %v458_v31 = vmax.f32 %v350_v25, 0.0  ;;  %v569_v25 = vsel %vm488_vm2, %v462_v53, 0.0  ;;  %v1315_v53 = vld [vmem:[%s2351_s3 + $0x48] sm:$0xf] }
  0xf3   :  { %v471_v22 = vmax.f32 %v382_v63, 0.0  ;;  %v397_v63 = vadd.f32 %v1846_v34, %v1915_v32  ;;  %v295_v32 = vadd.f32 %v1846_v34, %v1949_v18 }
  0xf4   :  { %v561_v46 = vsel %vm488_vm2, %v458_v31, 0.0  ;;  %v465_v31 = vmax.f32 %v367_v10, 0.0  ;;  %v1316_v10 = vor.u32 %v1482_v8, %v1315_v53 }
  0xf5   :  { %v562_v57 = vadd.f32 %v561_v46, %v560_v41  ;;  %v377_v46 = vadd.f32 %v1846_v34, %v376_v35  ;;  %v477_v8 = vmax.f32 %v397_v63, 0.0 }
  0xf6   :  { %v575_v44 = vsel %vm488_vm2, %v465_v31, 0.0  ;;  %785 = vmatpush.bf16.msrb.mxu3 %v1316_v10 }
  0xf7   :  { %v1971_v49 = vpop.f32.mrf.mxu0  ;;  %v351_v51 = vpop.f32.mrf.mxu1 }
  0xf8   :  { %v352_v56 = vadd.f32 %v1846_v34, %v351_v51  ;;  %v2004_v60 = vpop.f32.mrf.mxu3  ;;  %v297_v18 = vadd.f32 %v1846_v34, %v1971_v49 }
  0xf9   :  { %v412_v49 = vadd.f32 %v1846_v34, %v2004_v60 }
  0xfa   :  { %v459_v62 = vmax.f32 %v352_v56, 0.0  ;;  %v467_v56 = vmax.f32 %v372_v36, 0.0  ;;  %v1309_v36 = vld [vmem:[%s2351_s3 + $0x50] sm:$0xf0] }
  0xfc   :  { %v563_v2 = vsel %vm488_vm2, %v459_v62, 0.0  ;;  %v469_v62 = vmax.f32 %v377_v46, 0.0  ;;  %v579_v35 = vsel %vm488_vm2, %v467_v56, 0.0 }
  0xfd   :  { %v564_v4 = vadd.f32 %v563_v2, %v562_v57  ;;  %v468_v57 = vmax.f32 %v375_v39, 0.0 }
  0xff   :  { %v566_v16 = vadd.f32 %v565_v11, %v564_v4  ;;  %v1984_v17 = vpop.f32.mrf.mxu0  ;;  %v581_v2 = vsel %vm488_vm2, %v468_v57, 0.0  ;;  %v470_v4 = vmax.f32 %v380_v59, 0.0  ;;  %v395_v59 = vadd.f32 %v1846_v34, %v1906_v23 }
 0x100   :  { %v414_v46 = vpop.f32.mrf.mxu3  ;;  %v402_v23 = vadd.f32 %v1846_v34, %v1938_v1  ;;  %v407_v1 = vadd.f32 %v1846_v34, %v1966_v43 }
 0x101   :  { %v568_v24 = vadd.f32 %v567_v0, %v566_v16  ;;  %v385_v16 = vadd.f32 %v1846_v34, %v1855_v42  ;;  %v583_v0 = vsel %vm488_vm2, %v469_v62, 0.0  ;;  %v1479_v42 = vld [vmem:[%s2351_s3 + $0x44] sm:$0xf]  ;;  %v475_v62 = vmax.f32 %v392_v54, 0.0 }
 0x102   :  { %v481_v43 = vmax.f32 %v407_v1, 0.0 }
 0x103   :  { %v570_v29 = vadd.f32 %v569_v25, %v568_v24  ;;  %v1481_v24 = vld [vmem:[%s2351_s3 + $0x4c] sm:$0xf0]  ;;  %v472_v39 = vmax.f32 %v385_v16, 0.0  ;;  %v595_v53 = vsel %vm488_vm2, %v475_v62, 0.0 }
 0x104   :  { %v1308_v28 = vor.u32 %v1481_v24, %v1307_v13 }
 0x105   :  { %v572_v41 = vadd.f32 %v571_v21, %v570_v29  ;;  %v387_v29 = vadd.f32 %v1846_v34, %v1872_v55  ;;  %v585_v21 = vsel %vm488_vm2, %v470_v4, 0.0  ;;  %v1312_v55 = vor.u32 %v1479_v42, %v1309_v36 }
 0x106   :  { %759 = vmatpush.bf16.msrb.mxu1 %v1308_v28  ;;  %v589_v56 = vsel %vm488_vm2, %v472_v39, 0.0  ;;  %v400_v4 = vadd.f32 %v1846_v34, %v1929_v48  ;;  %v479_v48 = vmax.f32 %v402_v23, 0.0  ;;  %v599_v28 = vsel %vm488_vm2, %v477_v8, 0.0 }
 0x107   :  { %v574_v47 = vadd.f32 %v573_v45, %v572_v41  ;;  %v2000_v51 = vpop.f32.mrf.mxu0  ;;  %v390_v41 = vadd.f32 %v1846_v34, %v1886_v3  ;;  %v587_v45 = vsel %vm488_vm2, %v471_v22, 0.0  ;;  %772 = vmatpush.bf16.msrb.mxu2 %v1312_v55  ;;  %v437_v55 = vmax.f32 %v297_v18, 0.0 }
 0x108   :  { %v416_v16 = vpop.f32.mrf.mxu3  ;;  %v478_v10 = vmax.f32 %v400_v4, 0.0  ;;  %v603_v39 = vsel %vm488_vm2, %v479_v48, 0.0  ;;  %v302_v54 = vadd.f32 %v1846_v34, %v2000_v51  ;;  %v483_v4 = vmax.f32 %v412_v49, 0.0 }
 0x109   :  { %v576_v61 = vadd.f32 %v575_v44, %v574_v47  ;;  %v473_v47 = vmax.f32 %v387_v29, 0.0  ;;  %v474_v57 = vmax.f32 %v390_v41, 0.0  ;;  %v436_v29 = vmax.f32 %v295_v32, 0.0 }
 0x10a   :  { %v601_v42 = vsel %vm488_vm2, %v478_v10, 0.0  ;;  %v439_v23 = vmax.f32 %v302_v54, 0.0  ;;  %v611_v1 = vsel %vm488_vm2, %v483_v4, 0.0 }
 0x10b   :  { %v578_v40 = vadd.f32 %v577_v9, %v576_v61  ;;  %v591_v3 = vsel %vm488_vm2, %v473_v47, 0.0  ;;  %v593_v14 = vsel %vm488_vm2, %v474_v57, 0.0  ;;  %v1477_v57 = vld [vmem:[%s2351_s3 + $0x2c] sm:$0xf0] }
 0x10c   :  { %v518_v48 = vsel %vm488_vm2, %v439_v23, 0.0 }
 0x10d   :  { %v580_v11 = vadd.f32 %v579_v35, %v578_v40  ;;  %v476_v35 = vmax.f32 %v395_v59, 0.0 }
 0x10f   :  { %v582_v25 = vadd.f32 %v581_v2, %v580_v11  ;;  %v2025_v26 = vpop.f32.mrf.mxu0  ;;  %v292_v2 = vadd.f32 %v1846_v34, %v1943_v7  ;;  %v405_v7 = vadd.f32 %v1846_v34, %v1947_v15  ;;  %v410_v15 = vadd.f32 %v1846_v34, %v1986_v20 }
 0x110   :  { %v415_v20 = vadd.f32 %v1846_v34, %v414_v46  ;;  %v305_v51 = vadd.f32 %v1846_v34, %v2025_v26  ;;  %v1478_v46 = vld [vmem:[%s2351_s3 + $0x34] sm:$0xf0]  ;;  %v419_v63 = vpop.f32.mrf.mxu3 }
 0x111   :  { %v584_v31 = vadd.f32 %v583_v0, %v582_v25  ;;  %v597_v0 = vsel %vm488_vm2, %v476_v35, 0.0  ;;  %v435_v22 = vmax.f32 %v292_v2, 0.0  ;;  %v480_v36 = vmax.f32 %v405_v7, 0.0 }
 0x112   :  { %v482_v60 = vmax.f32 %v410_v15, 0.0  ;;  %v607_v2 = vsel %vm488_vm2, %v481_v43, 0.0  ;;  %v484_v26 = vmax.f32 %v415_v20, 0.0  ;;  %v440_v32 = vmax.f32 %v305_v51, 0.0  ;;  %v1275_v15 = vld [vmem:[%s2351_s3] sm:$0xf] }
 0x113   :  { %v586_v30 = vadd.f32 %v585_v21, %v584_v31  ;;  %v510_v31 = vsel %vm488_vm2, %v435_v22, 0.0  ;;  %v1471_v20 = vld [vmem:[%s2351_s3 + $0x4] sm:$0xf] }
 0x114   :  { %v511_v47 = vadd.f32 %v510_v31, %v1941_v6  ;;  %v605_v6 = vsel %vm488_vm2, %v480_v36, 0.0  ;;  %v609_v8 = vsel %vm488_vm2, %v482_v60, 0.0  ;;  %v1293_v36 = vld [vmem:[%s2351_s3 + $0x30] sm:$0xf0] }
 0x115   :  { %v588_v44 = vadd.f32 %v587_v45, %v586_v30  ;;  %v512_v45 = vsel %vm488_vm2, %v436_v29, 0.0  ;;  %v300_v30 = vadd.f32 %v1846_v34, %v1984_v17  ;;  %v1299_v17 = vld [vmem:[%s2351_s3 + $0x28] sm:$0xf] }
 0x117   :  { %v590_v61 = vadd.f32 %v589_v56, %v588_v44  ;;  %v2044_v9 = vpop.f32.mrf.mxu0  ;;  %v1291_v56 = vld [vmem:[%s2351_s3 + $0x20] sm:$0xf]  ;;  %v438_v35 = vmax.f32 %v300_v30, 0.0  ;;  %v1474_v30 = vld [vmem:[%s2351_s3 + $0x14] sm:$0xf0] }
 0x118   :  { %v1292_v59 = vor.u32 %v1477_v57, %v1291_v56  ;;  %v1277_v56 = vld [vmem:[%s2351_s3 + $0x10] sm:$0xf0] }
 0x119   :  { %v592_v40 = vadd.f32 %v591_v3, %v590_v61  ;;  %v513_v61 = vadd.f32 %v512_v45, %v511_v47  ;;  %v516_v7 = vsel %vm488_vm2, %v438_v35, 0.0  ;;  %v1473_v45 = vld [vmem:[%s2351_s3 + $0xc] sm:$0xf0]  ;;  %v421_v47 = vpop.f32.mrf.mxu3  ;;  %v322_v35 = vadd.f32 %v1846_v34, %v1850_v37 }
 0x11a   :  { %760 = vmatpush.bf16.msrb.mxu1 %v1292_v59  ;;  %v1276_v54 = vor.u32 %v1473_v45, %v1275_v15  ;;  %v327_v37 = vadd.f32 %v1846_v34, %v1874_v58  ;;  %v335_v15 = vadd.f32 %v1846_v34, %v1901_v19 }
 0x11b   :  { %v594_v11 = vadd.f32 %v593_v14, %v592_v40  ;;  %v1300_v40 = vor.u32 %v1478_v46, %v1299_v17  ;;  %v514_v14 = vsel %vm488_vm2, %v437_v55, 0.0  ;;  %v1283_v55 = vld [vmem:[%s2351_s3 + $0x8] sm:$0xf] }
 0x11c   :  { %v515_v10 = vadd.f32 %v514_v14, %v513_v61 }
 0x11d   :  { %v596_v13 = vadd.f32 %v595_v53, %v594_v11  ;;  %v417_v53 = vadd.f32 %v1846_v34, %v416_v16  ;;  %786 = vmatpush.bf16.msrb.mxu3 %v1300_v40  ;;  %v320_v40 = vadd.f32 %v1846_v34, %v1841_v33  ;;  %v325_v33 = vadd.f32 %v1846_v34, %v1865_v50 }
 0x11e   :  { %761 = vmatpush.bf16.msrb.mxu1 %v1276_v54  ;;  %v332_v50 = vadd.f32 %v1846_v34, %v1895_v12  ;;  %v337_v12 = vadd.f32 %v1846_v34, %v1909_v27  ;;  %v1333_v27 = vld [vmem:[%s2351_s3 + $0x78] sm:$0xf0] }
 0x11f   :  { %v598_v24 = vadd.f32 %v597_v0, %v596_v13  ;;  %v309_v25 = vpop.f32.mrf.mxu0  ;;  %v307_v13 = vadd.f32 %v1846_v34, %v2044_v9  ;;  %v485_v16 = vmax.f32 %v417_v53, 0.0  ;;  %v517_v9 = vadd.f32 %v516_v7, %v515_v10 }
 0x120   :  { %v310_v0 = vadd.f32 %v1846_v34, %v309_v25 }
 0x121   :  { %v600_v21 = vadd.f32 %v599_v28, %v598_v24  ;;  %v613_v24 = vsel %vm488_vm2, %v484_v26, 0.0  ;;  %v520_v28 = vsel %vm488_vm2, %v440_v32, 0.0  ;;  %v441_v29 = vmax.f32 %v307_v13, 0.0 }
 0x122   :  { %v442_v18 = vmax.f32 %v310_v0, 0.0  ;;  %v519_v49 = vadd.f32 %v518_v48, %v517_v9  ;;  %v615_v59 = vsel %vm488_vm2, %v485_v16, 0.0  ;;  %v446_v13 = vmax.f32 %v320_v40, 0.0 }
 0x123   :  { %v602_v41 = vadd.f32 %v601_v42, %v600_v21  ;;  %v1475_v42 = vld [vmem:[%s2351_s3 + $0x24] sm:$0xf]  ;;  %v522_v57 = vsel %vm488_vm2, %v441_v29, 0.0  ;;  %v330_v29 = vadd.f32 %v1846_v34, %v1888_v5 }
 0x124   :  { %v521_v60 = vadd.f32 %v520_v28, %v519_v49  ;;  %v524_v46 = vsel %vm488_vm2, %v442_v18, 0.0  ;;  %v532_v16 = vsel %vm488_vm2, %v446_v13, 0.0  ;;  %v448_v28 = vmax.f32 %v325_v33, 0.0 }
 0x125   :  { %v604_v44 = vadd.f32 %v603_v39, %v602_v41  ;;  %v420_v39 = vadd.f32 %v1846_v34, %v419_v63  ;;  %v1296_v41 = vor.u32 %v1475_v42, %v1293_v36  ;;  %v450_v36 = vmax.f32 %v330_v29, 0.0 }
 0x126   :  { %v523_v63 = vadd.f32 %v522_v57, %v521_v60  ;;  %v536_v42 = vsel %vm488_vm2, %v448_v28, 0.0  ;;  %v452_v49 = vmax.f32 %v335_v15, 0.0  ;;  %v342_v57 = vadd.f32 %v1846_v34, %v1931_v52  ;;  %v1301_v52 = vld [vmem:[%s2351_s3 + $0x38] sm:$0xf0] }
 0x127   :  { %v606_v3 = vadd.f32 %v605_v6, %v604_v44  ;;  %v311_v62 = vpop.f32.mrf.mxu0  ;;  %v1284_v44 = vor.u32 %v1474_v30, %v1283_v55  ;;  %773 = vmatpush.bf16.msrb.mxu2 %v1296_v41  ;;  %v1280_v6 = vor.u32 %v1471_v20, %v1277_v56  ;;  %v486_v61 = vmax.f32 %v420_v39, 0.0  ;;  %v1484_v20 = vld [vmem:[%s2351_s3 + $0x6c] sm:$0xf] }
 0x128   :  { %v312_v21 = vadd.f32 %v1846_v34, %v311_v62  ;;  %v422_v62 = vadd.f32 %v1846_v34, %v421_v47  ;;  %v451_v39 = vmax.f32 %v332_v50, 0.0  ;;  %v540_v30 = vsel %vm488_vm2, %v450_v36, 0.0  ;;  %v654_v36 = vld [vmem:[%s2352_s4] sm:$0xf] }
 0x129   :  { %v608_v11 = vadd.f32 %v607_v2, %v606_v3  ;;  %787 = vmatpush.bf16.msrb.mxu3 %v1284_v44  ;;  %v525_v2 = vadd.f32 %v524_v46, %v523_v63  ;;  %v340_v47 = vadd.f32 %v1846_v34, %v1917_v38  ;;  %v453_v56 = vmax.f32 %v337_v12, 0.0  ;;  %v1480_v38 = vld [vmem:[%s2351_s3 + $0x4c] sm:$0xf] }
 0x12a   :  { %v443_v17 = vmax.f32 %v312_v21, 0.0  ;;  %v487_v53 = vmax.f32 %v422_v62, 0.0  ;;  %v1569_v21 = vmov 256.0   ;;  %v542_v54 = vsel %vm488_vm2, %v451_v39, 0.0 }
 0x12b   :  { %v610_v22 = vadd.f32 %v609_v8, %v608_v11  ;;  %774 = vmatpush.bf16.msrb.mxu2 %v1280_v6  ;;  %v617_v11 = vsel %vm488_vm2, %v486_v61, 0.0  ;;  %1533 = vrcp.f32 %v1569_v21  ;;  %v1336_v6 = vor.u32 %v1484_v20, %v1333_v27 }
 0x12c   :  { %v526_v14 = vsel %vm488_vm2, %v443_v17, 0.0  ;;  %v619_v48 = vsel %vm488_vm2, %v487_v53, 0.0  ;;  %v454_v46 = vmax.f32 %v340_v47, 0.0  ;;  %v546_v63 = vsel %vm488_vm2, %v453_v56, 0.0  ;;  %v1285_v53 = vld [vmem:[%s2351_s3 + $0x18] sm:$0xf0] }
 0x12d   :  { %v612_v31 = vadd.f32 %v611_v1, %v610_v22  ;;  %v527_v32 = vadd.f32 %v526_v14, %v525_v2  ;;  %v447_v22 = vmax.f32 %v322_v35, 0.0  ;;  %797 = vmatpush.bf16.msra.mxu1 %v1336_v6  ;;  %v455_v40 = vmax.f32 %v342_v57, 0.0 }
 0x12e   :  { %v548_v2 = vsel %vm488_vm2, %v454_v46, 0.0  ;;  %v657_v15 = vperm.slane %v654_v36, 1  ;;  %v656_v39 = vperm.slane %v654_v36, 0 }
 0x12f   :  { %v314_v25 = vpop.f32.mrf.mxu0  ;;  %v614_v51 = vadd.f32 %v613_v24, %v612_v31  ;;  %v534_v58 = vsel %vm488_vm2, %v447_v22, 0.0  ;;  %v449_v31 = vmax.f32 %v327_v37, 0.0 }
 0x130   :  { %v315_v43 = vadd.f32 %v1846_v34, %v314_v25 }
 0x131   :  { %v616_v4 = vadd.f32 %v615_v59, %v614_v51  ;;  %v538_v41 = vsel %vm488_vm2, %v449_v31, 0.0  ;;  %v1534_v45 = vpop.eup %1533  ;;  %v1317_v51 = vld [vmem:[%s2351_s3 + $0x58] sm:$0xf0]  ;;  %v544_v59 = vsel %vm488_vm2, %v452_v49, 0.0 }
 0x132   :  { %v444_v3 = vmax.f32 %v315_v43, 0.0  ;;  %v628_v17 = vmul.f32 256.0, %v1534_v45  ;;  %v1320_v61 = vor.u32 %v1480_v38, %v1317_v51  ;;  %vm632_vm3 = vweird.f32 %v1534_v45 }
 0x133   :  { %v618_v10 = vadd.f32 %v617_v11, %v616_v4  ;;  %v1570_v51 = vmov 512.0  }
 0x134   :  { %v528_v26 = vsel %vm488_vm2, %v444_v3, 0.0  ;;  %v629_v14 = vsub.f32 1.0, %v628_v17  ;;  %798 = vmatpush.bf16.msra.mxu1 %v1320_v61  ;;  %1535 = vrcp.f32 %v1570_v51  ;;  %v1494_v61 = vld [vmem:[%s2355_s7 + $0x38] sm:$0xff]  ;;  %v856_v51 = vld [vmem:[%s2353_s5] sm:$0xf] }
 0x135   :  { %v529_v7 = vadd.f32 %v528_v26, %v527_v32  ;;  %v620_v18 = vadd.f32 %v619_v48, %v618_v10  ;;  %v1472_v26 = vld [vmem:[%s2351_s3 + $0xc] sm:$0xf]  ;;  %1152 = vmatpush.bf16.msra.mxu2 %v1494_v61  ;;  %v858_v61 = vperm.slane %v856_v51, 0 }
 0x136   :  { %v630_v32 = vmul.f32 %v1534_v45, %v629_v14  ;;  %v1288_v33 = vor.u32 %v1472_v26, %v1285_v53 }
 0x137   :  { %v316_v23 = vpop.f32.mrf.mxu0  ;;  %v621_v43 = vrot.slane %v620_v18, 4 }
 0x138   :  { %v317_v8 = vadd.f32 %v1846_v34, %v316_v23  ;;  %v1476_v34 = vld [vmem:[%s2351_s3 + $0x2c] sm:$0xf]  ;;  %v631_v10 = vadd.f32 %v1534_v45, %v630_v32 }
 0x139   :  { %v622_v44 = vadd.f32 %v621_v43, %v620_v18  ;;  %v1304_v4 = vor.u32 %v1476_v34, %v1301_v52  ;;  %v1492_v34 = vld [vmem:[%s2355_s7 + $0x28] sm:$0xff] }
 0x13a   :  { %v445_v0 = vmax.f32 %v317_v8, 0.0  ;;  %v550_v8 = vsel %vm488_vm2, %v455_v40, 0.0 }
 0x13b   :  { %v623_v3 = vrot.slane %v622_v44, 2  ;;  %799 = vmatpush.bf16.msra.mxu1 %v1304_v4 }
 0x13c   :  { %v530_v1 = vsel %vm488_vm2, %v445_v0, 0.0 }
 0x13d   :  { %v531_v24 = vadd.f32 %v530_v1, %v529_v7  ;;  %v624_v23 = vadd.f32 %v623_v3, %v622_v44  ;;  %v633_v1 = vsel %vm632_vm3, %v1534_v45, %v631_v10  ;;  %v1493_v3 = vld [vmem:[%s2355_s7 + $0x30] sm:$0xff] }
 0x13e   :  { %1153 = vmatpush.bf16.msra.mxu2 %v1493_v3  ;;  %v859_v3 = vperm.slane %v856_v51, 1 }
 0x13f   :  { %v533_v9 = vadd.f32 %v532_v16, %v531_v24  ;;  %v625_v0 = vrot.slane %v624_v23, 1  ;;  %800 = vmatpush.bf16.msra.mxu1 %v1288_v33 }
 0x141   :  { %v535_v25 = vadd.f32 %v534_v58, %v533_v9  ;;  %v626_v37 = vadd.f32 %v625_v0, %v624_v23 }
 0x142   :  { %1154 = vmatpush.bf16.msra.mxu2 %v1492_v34 }
 0x143   :  { %v537_v5 = vadd.f32 %v536_v42, %v535_v25  ;;  %v635_v16 = vmul.f32 %v633_v1, %v626_v37 }
 0x145   :  { %v539_v55 = vadd.f32 %v538_v41, %v537_v5  ;;  %v637_v50 = vpack.c.bf16 %v635_v16, %v635_v16  ;;  %v1490_v16 = vld [vmem:[%s2355_s7 + $0x18] sm:$0xff] }
 0x147   :  { %v541_v19 = vadd.f32 %v540_v30, %v539_v55  ;;  %v667_v58 = vunpack.c.l.b16 %v637_v50  ;;  %v658_v55 = vperm.slane %v654_v36, 2  ;;  %v1489_v50 = vld [vmem:[%s2355_s7 + $0x10] sm:$0xff] }
 0x149   :  { %v543_v60 = vadd.f32 %v542_v54, %v541_v19  ;;  %v659_v54 = vperm.slane %v654_v36, 3  ;;  %v1506_v36 = vld [vmem:[%s2355_s7 + $0x98] sm:$0xff] }
 0x14b   :  { %v545_v62 = vadd.f32 %v544_v59, %v543_v60  ;;  %v1536_v59 = vpop.eup %1535 }
 0x14c   :  { %v816_v46 = vmul.f32 512.0, %v1536_v59  ;;  %vm820_vm5 = vweird.f32 %v1536_v59 }
 0x14d   :  { %v547_v35 = vadd.f32 %v546_v63, %v545_v62 }
 0x14e   :  { %v817_v62 = vsub.f32 1.0, %v816_v46 }
 0x14f   :  { %v549_v11 = vadd.f32 %v548_v2, %v547_v35 }
 0x150   :  { %v818_v52 = vmul.f32 %v1536_v59, %v817_v62  ;;  %v860_v62 = vperm.slane %v856_v51, 2 }
 0x151   :  { %v551_v13 = vadd.f32 %v550_v8, %v549_v11 }
 0x152   :  { %v819_v63 = vadd.f32 %v1536_v59, %v818_v52 }
 0x153   :  { %v552_v22 = vrot.slane %v551_v13, 4 }
 0x154   :  { %v2219_v40 = vsel %vm820_vm5, %v1536_v59, %v819_v63  ;;  %v870_v59 = vld [vmem:[%s2354_s6] sm:$0xf] }
 0x155   :  { %v553_v7 = vadd.f32 %v552_v22, %v551_v13  ;;  %v872_v52 = vperm.slane %v870_v59, 0  ;;  %v873_v63 = vperm.slane %v870_v59, 1 }
 0x157   :  { %v554_v48 = vrot.slane %v553_v7, 2 }
 0x159   :  { %v555_v24 = vadd.f32 %v554_v48, %v553_v7  ;;  %v1491_v48 = vld [vmem:[%s2355_s7 + $0x20] sm:$0xff] }
 0x15a   :  { %1155 = vmatpush.bf16.msra.mxu2 %v1491_v48 }
 0x15b   :  { %v556_v28 = vrot.slane %v555_v24, 1 }
 0x15d   :  { %v557_v29 = vadd.f32 %v556_v28, %v555_v24  ;;  %v1510_v24 = vld [vmem:[%s2355_s7 + $0xb8] sm:$0xff]  ;;  %v1501_v28 = vld [vmem:[%s2355_s7 + $0x70] sm:$0xff] }
 0x15e   :  { %1156 = vmatpush.bf16.msra.mxu2 %v1490_v16 }
 0x15f   :  { %v634_v18 = vmul.f32 %v633_v1, %v557_v29  ;;  %v1502_v1 = vld [vmem:[%s2355_s7 + $0x78] sm:$0xff]  ;;  %v1509_v29 = vld [vmem:[%s2355_s7 + $0xb0] sm:$0xff] }
 0x160   :  { %1165 = vmatpush.bf16.msra.mxu3 %v1502_v1 }
 0x161   :  { %v636_v21 = vpack.c.bf16 %v634_v18, %v634_v18  ;;  %v1500_v18 = vld [vmem:[%s2355_s7 + $0x68] sm:$0xff] }
 0x162   :  { %1157 = vmatpush.bf16.msra.mxu2 %v1489_v50 }
 0x163   :  { %v666_v9 = vunpack.c.l.b16 %v636_v21  ;;  %v1508_v21 = vld [vmem:[%s2355_s7 + $0xa8] sm:$0xff] }
 0x164   :  { %1166 = vmatpush.bf16.msra.mxu3 %v1501_v28 }
 0x165   :  { %v669_v31 = vsel %vm668_vm4, %v667_v58, %v666_v9  ;;  %v1488_v9 = vld [vmem:[%s2355_s7 + $0x8] sm:$0xff]  ;;  %v1499_v58 = vld [vmem:[%s2355_s7 + $0x60] sm:$0xff] }
 0x166   :  { %v670_v25 = vpack.c.b16 %v669_v31, %v669_v31  ;;  %v1507_v31 = vld [vmem:[%s2355_s7 + $0xa0] sm:$0xff]  ;;  %1158 = vmatpush.bf16.msra.mxu2 %v1488_v9 }
 0x167   :  { %v1532_v9 = vld [vmem:[%s2356_s8] ss:$0 sm:$0xff] }
 0x168   :  { %1337 = vmatmul.msk.bf16.vlgmr.msrb.gmra.mxu1 %vm488_vm2, %v670_v25  ;;  %1338 = vmatmul.msk.bf16.vlgmr.msrb.gmra.mxu2 %vm488_vm2, %v670_v25 }
 0x169   :  { %1339 = vmatmul.msk.bf16.vlgmr.msrb.gmra.mxu3 %vm488_vm2, %v670_v25  ;;  %1178 = vmatpush.bf16.msrb.mxu1 %v1510_v24 }
 0x16a   :  { %1167 = vmatpush.bf16.msra.mxu3 %v1500_v18 }
 0x16d   :  { %1179 = vmatpush.bf16.msrb.mxu1 %v1509_v29 }
 0x16e   :  { %1168 = vmatpush.bf16.msra.mxu3 %v1499_v58 }
 0x171   :  { %1180 = vmatpush.bf16.msrb.mxu1 %v1508_v21 }
 0x175   :  { %1181 = vmatpush.bf16.msrb.mxu1 %v1507_v31 }
 0x178   :  { %1340 = vmatmul.msk.bf16.vlgmr.msra.gmra.mxu1 %vm488_vm2, %v670_v25  ;;  %v1487_v25 = vld [vmem:[%s2355_s7] sm:$0xff] }
 0x179   :  { %1159 = vmatpush.bf16.msra.mxu2 %v1487_v25  ;;  %1182 = vmatpush.bf16.msrb.mxu1 %v1506_v36 }
 0x1e5   :  { %v763_v42 = vpop.f32.mrf.mxu1 }
 0x1e6   :  { %v764_v45 = vadd.f32 %v763_v42, %v656_v39  ;;  %v1498_v42 = vld [vmem:[%s2355_s7 + $0x58] sm:$0xff]  ;;  %v1497_v39 = vld [vmem:[%s2355_s7 + $0x50] sm:$0xff] }
 0x1e7   :  { %1169 = vmatpush.bf16.msra.mxu3 %v1498_v42 }
 0x1e8   :  { %v806_v49 = vsel %vm251_vm0, %v764_v45, 0.0 }
 0x1eb   :  { %v776_v43 = vpop.f32.mrf.mxu2  ;;  %1170 = vmatpush.bf16.msra.mxu3 %v1497_v39 }
 0x1ec   :  { %v777_v5 = vadd.f32 %v776_v43, %v657_v15  ;;  %v789_v41 = vpop.f32.mrf.mxu3  ;;  %v1518_v15 = vld [vmem:[%s2355_s7 + $0xf8] sm:$0xff]  ;;  %v1505_v43 = vld [vmem:[%s2355_s7 + $0x90] sm:$0xff] }
 0x1ed   :  { %v765_v12 = vpop.f32.mrf.mxu1  ;;  %v790_v47 = vadd.f32 %v789_v41, %v658_v55  ;;  %1191 = vmatpush.bf16.msrb.mxu2 %v1518_v15  ;;  %1183 = vmatpush.bf16.msrb.mxu1 %v1505_v43  ;;  %v1496_v41 = vld [vmem:[%s2355_s7 + $0x48] sm:$0xff]  ;;  %v1495_v55 = vld [vmem:[%s2355_s7 + $0x40] sm:$0xff] }
 0x1ee   :  { %v807_v30 = vsel %vm251_vm0, %v777_v5, 0.0  ;;  %v1504_v12 = vld [vmem:[%s2355_s7 + $0x88] sm:$0xff] }
 0x1ef   :  { %v808_v44 = vadd.f32 %v807_v30, %v806_v49  ;;  %v809_v56 = vsel %vm251_vm0, %v790_v47, 0.0  ;;  %1171 = vmatpush.bf16.msra.mxu3 %v1496_v41  ;;  %v1503_v30 = vld [vmem:[%s2355_s7 + $0x80] sm:$0xff] }
 0x1f0   :  { %v1515_v49 = vld [vmem:[%s2355_s7 + $0xe0] sm:$0xff] }
 0x1f1   :  { %v810_v17 = vadd.f32 %v809_v56, %v808_v44  ;;  %1184 = vmatpush.bf16.msrb.mxu1 %v1504_v12  ;;  %v1514_v44 = vld [vmem:[%s2355_s7 + $0xd8] sm:$0xff] }
 0x1f3   :  { %v778_v19 = vpop.f32.mrf.mxu2  ;;  %1172 = vmatpush.bf16.msra.mxu3 %v1495_v55 }
 0x1f4   :  { %v791_v20 = vpop.f32.mrf.mxu3 }
 0x1f5   :  { %v802_v27 = vpop.f32.mrf.mxu1  ;;  %1185 = vmatpush.bf16.msrb.mxu1 %v1503_v30  ;;  %v1513_v20 = vld [vmem:[%s2355_s7 + $0xd0] sm:$0xff] }
 0x1f6   :  { %v803_v57 = vadd.f32 %v802_v27, %v659_v54  ;;  %v1512_v27 = vld [vmem:[%s2355_s7 + $0xc8] sm:$0xff] }
 0x1f8   :  { %v811_v6 = vsel %vm251_vm0, %v803_v57, 0.0 }
 0x1f9   :  { %v812_v60 = vadd.f32 %v811_v6, %v810_v17  ;;  %v1511_v17 = vld [vmem:[%s2355_s7 + $0xc0] sm:$0xff] }
 0x1fb   :  { %813 = vadd.xlane.f32.xlu0 %v812_v60 }
 0x1fd   :  { %v804_v38 = vpop.f32.mrf.mxu1 }
 0x26e   :  { %v814_v14 = vpop.xlane.xlu0 %813 }
 0x26f   :  { %v822_v35 = vmul.f32 %v2219_v40, %v814_v14 }
 0x271   :  { %v2222_v2 = vsub.f32 %v764_v45, %v822_v35  ;;  %v2224_v4 = vsub.f32 %v777_v5, %v822_v35  ;;  %v2226_v23 = vsub.f32 %v790_v47, %v822_v35  ;;  %v2228_v11 = vsub.f32 %v803_v57, %v822_v35  ;;  %v1517_v5 = vld [vmem:[%s2355_s7 + $0xf0] sm:$0xff]  ;;  %v1516_v45 = vld [vmem:[%s2355_s7 + $0xe8] sm:$0xff]  ;;  %s1571_s7 = smov [#allocation2]  }
 0x272   :  { %1192 = vmatpush.bf16.msrb.mxu2 %v1517_v5  ;;  %s1222_s8 = sshll.u32 %s1571_s7, 4  ;;  %s1223_s8 = int_to_ptr.vmem [resolvable:$true] %s1222_s8 }
 0x273   :  { %v827_v26 = vmul.f32 %v2222_v2, %v2222_v2  ;;  %v828_v53 = vmul.f32 %v2224_v4, %v2224_v4  ;;  %v829_v8 = vmul.f32 %v2226_v23, %v2226_v23  ;;  %v830_v32 = vmul.f32 %v2228_v11, %v2228_v11 }
 0x275   :  { %v831_v13 = vsel %vm251_vm0, %v827_v26, 0.0  ;;  %v832_v33 = vsel %vm251_vm0, %v828_v53, 0.0  ;;  %v834_v22 = vsel %vm251_vm0, %v829_v8, 0.0  ;;  %v836_v7 = vsel %vm251_vm0, %v830_v32, 0.0 }
 0x276   :  { %v833_v0 = vadd.f32 %v832_v33, %v831_v13  ;;  %1193 = vmatpush.bf16.msrb.mxu2 %v1516_v45  ;;  %v874_v26 = vperm.slane %v870_v59, 2 }
 0x278   :  { %v835_v10 = vadd.f32 %v834_v22, %v833_v0 }
 0x27a   :  { %v837_v37 = vadd.f32 %v836_v7, %v835_v10  ;;  %1194 = vmatpush.bf16.msrb.mxu2 %v1515_v49 }
 0x27c   :  { %838 = vadd.xlane.f32.xlu0 %v837_v37  ;;  %v861_v37 = vperm.slane %v856_v51, 3 }
 0x27e   :  { %1195 = vmatpush.bf16.msrb.mxu2 %v1514_v44 }
 0x282   :  { %1196 = vmatpush.bf16.msrb.mxu2 %v1513_v20 }
 0x286   :  { %1197 = vmatpush.bf16.msrb.mxu2 %v1512_v27 }
 0x28a   :  { %1198 = vmatpush.bf16.msrb.mxu2 %v1511_v17 }
 0x2ef   :  { %v839_v47 = vpop.xlane.xlu0 %838 }
 0x2f0   :  { %v840_v54 = vmul.f32 %v839_v47, %v2219_v40 }
 0x2f2   :  { %v841_v19 = vadd.f32 1e-05, %v840_v54 }
 0x2f4   :  { %1537 = vrsqrt.f32 %v841_v19  ;;  %vm848_vm7 = vweird.f32 %v841_v19 }
 0x2fa   :  { %v1538_v56 = vpop.eup %1537 }
 0x2fb   :  { %v843_v57 = vmul.f32 %v1538_v56, %v841_v19  ;;  %vm849_vm6 = vweird.f32 %v1538_v56 }
 0x2fc   :  { %vm850_vm8 = vmor %vm848_vm7, %vm849_vm6 }
 0x2fd   :  { %v844_v6 = vmul.f32 %v1538_v56, %v843_v57 }
 0x2ff   :  { %v845_v60 = vmul.f32 0.5, %v844_v6 }
 0x301   :  { %v846_v38 = vsub.f32 1.5, %v845_v60 }
 0x303   :  { %v847_v46 = vmul.f32 %v1538_v56, %v846_v38 }
 0x305   :  { %v851_v34 = vsel %vm850_vm8, %v1538_v56, %v847_v46 }
 0x306   :  { %v852_v40 = vmul.f32 %v851_v34, %v2222_v2  ;;  %v853_v14 = vmul.f32 %v851_v34, %v2224_v4  ;;  %v854_v35 = vmul.f32 %v851_v34, %v2226_v23  ;;  %v855_v2 = vmul.f32 %v851_v34, %v2228_v11 }
 0x307   :  { %v875_v23 = vperm.slane %v870_v59, 3 }
 0x308   :  { %v866_v53 = vmul.f32 %v858_v61, %v852_v40  ;;  %v867_v8 = vmul.f32 %v859_v3, %v853_v14  ;;  %v868_v32 = vmul.f32 %v860_v62, %v854_v35  ;;  %v869_v4 = vmul.f32 %v861_v37, %v855_v2 }
 0x30a   :  { %v880_v13 = vadd.f32 %v872_v52, %v866_v53  ;;  %v881_v33 = vadd.f32 %v873_v63, %v867_v8  ;;  %v882_v0 = vadd.f32 %v874_v26, %v868_v32  ;;  %v883_v16 = vadd.f32 %v875_v23, %v869_v4 }
 0x30c   :  { %v884_v22 = vmax.f32 %v880_v13, 0.0  ;;  %v885_v10 = vmax.f32 %v881_v33, 0.0  ;;  %v886_v7 = vmax.f32 %v882_v0, 0.0  ;;  %v887_v28 = vmax.f32 %v883_v16, 0.0 }
 0x30e   :  { %v888_v48 = vpack.c.bf16 %v884_v22, %v884_v22  ;;  %v889_v1 = vpack.c.bf16 %v885_v10, %v885_v10  ;;  %v890_v24 = vpack.c.bf16 %v886_v7, %v886_v7  ;;  %v891_v29 = vpack.c.bf16 %v887_v28, %v887_v28 }
 0x310   :  { %1160 = vmatmul.bf16.vlgmr.msra.gmra.mxu2 %v888_v48  ;;  %1173 = vmatmul.bf16.vlgmr.msra.gmra.mxu3 %v889_v1 }
 0x311   :  { %1186 = vmatmul.bf16.vlgmr.msrb.gmra.mxu1 %v890_v24 }
 0x320   :  { %1199 = vmatmul.bf16.vlgmr.msrb.gmra.mxu2 %v891_v29 }
 0x38e   :  { %v1187_v50 = vpop.f32.mrf.mxu1 }
 0x393   :  { %v1161_v18 = vpop.f32.mrf.mxu2  ;;  %v1174_v21 = vpop.f32.mrf.mxu3 }
 0x394   :  { %v1162_v31 = vadd.f32 %v1532_v9, %v1161_v18 }
 0x396   :  { %v1189_v58 = vpop.f32.mrf.mxu1  ;;  %v1175_v42 = vadd.f32 %v1174_v21, %v1162_v31 }
 0x398   :  { %v1188_v36 = vadd.f32 %v1187_v50, %v1175_v42 }
 0x39b   :  { %v1163_v25 = vpop.f32.mrf.mxu2  ;;  %v1176_v11 = vpop.f32.mrf.mxu3 }
 0x3a3   :  { %v1200_v15 = vpop.f32.mrf.mxu2 }
 0x3a4   :  { %v1201_v39 = vadd.f32 %v1200_v15, %v1188_v36 }
 0x3a6   :  { %v1204_v43 = vsel %vm251_vm0, %v1201_v39, -inf }
 0x3a7   :  { %1205 = vmax.xlane.f32.xlu1 %v1204_v43 }
 0x3ab   :  { %v1202_v5 = vpop.f32.mrf.mxu2 }
 0x41a   :  { %v1206_v41 = vpop.xlane.xlu1 %1205 }
 0x41b   :  { %v1207_v12 = vsub.f32 %v1201_v39, %v1206_v41 }
 0x41d   :  { %v1208_v45 = vmul.f32 1.442695, %v1207_v12 }
 0x41f   :  { %1539 = vpow2.f32 %v1208_v45 }
 0x425   :  { %v1540_v55 = vpop.eup %1539 }
 0x426   :  { %v1210_v30 = vsel %vm251_vm0, %v1540_v55, 0.0 }
 0x427   :  { %1211 = vadd.xlane.f32.xlu1 %v1210_v30 }
 0x49a   :  { %v1212_v49 = vpop.xlane.xlu1 %1211 }
 0x49b   :  { %1541 = vlog2.f32 %v1212_v49 }
 0x4a1   :  { %v1542_v47 = vpop.eup %1541 }
 0x4a2   :  { %v1214_v54 = vmul.f32 0.6931472, %v1542_v47 }
 0x4a4   :  { %v1215_v44 = vsub.f32 %v1207_v12, %v1214_v54 }
 0x4a6   :  { %1216 = vst [vmem:[#allocation2] sm:$0x3] %v1215_v44 }
 0x4a7   :  { %1227 = dma.vmem_to_hbm [thread:$0]  %s1223_s8, 32, %s1225_s21, [#allocation3]  }
 0x4a8   :  { %1567 = dma.done.wait [#allocation3], 32  }
 0x4a9   :  { %1568 = vsyncadd [#allocation3], 4294967264 }
 0x4aa   :  { %1232 = vsyncpa [#allocation3], 1 }

</bundles_post_ra>
